<compile_context>
chip_gen: v6e
topology: v6e:2x2x1
jax: 0.10.0
libtpu: 0.0.40
codegen_flags: <defaults>
</compile_context>

<pallas_src>
import functools

import numpy as np
import jax
import jax.numpy as jnp
from jax import lax
from jax.experimental import pallas as pl
from jax.experimental.pallas import tpu as pltpu


def _choose_tile_rows(n_rows, k, d, vmem_budget_bytes=36 * 1024 * 1024):
    """Pick the largest lane-friendly row tile whose working set fits the VMEM budget."""
    n_pad128 = ((n_rows + 127) // 128) * 128
    for tn in (2048, 1024, 512, 256, 128):
        if tn > n_pad128:
            continue
        working = (
            2 * k * d * 4                # codebook (double-buffered by the pipeline)
            + 2 * k * 4 + 2 * 2 * k * 4  # ||e||^2/2 row + (2, K) hi/lo code ids
            + 4 * tn * d * 4             # z + q tiles, double-buffered
            + 2 * tn * 4                 # idx tile
            + 3 * k * tn * 4             # (TN, K) f32 intermediates: cross/score/onehot
            + 2 * tn * d * 4             # q / diff f32 temporaries
        )
        if working <= vmem_budget_bytes:
            return tn
    return 128


def _vq_kernel(z_ref, e_ref, esq_ref, khl_ref, q_ref, idx_ref, ssd_ref, *,
               n_valid, tile_n, n_padded, cross_dtype):
    i = pl.program_id(0)

    z = z_ref[...].astype(jnp.float32)        # (TN, D)
    e = e_ref[...]                            # (K, D) f32
    K = e.shape[0]

    # Cross term z.e_k on the MXU; bf16 operands by default, f32 accumulation.
    cross = lax.dot_general(z.astype(cross_dtype), e.astype(cross_dtype),
                            (((1,), (1,)), ((), ())),
                            preferred_element_type=jnp.float32)          # (TN, K)

    # argmin_k ||z - e_k||^2 == argmin_k (||e_k||^2/2 - z.e_k); the per-row ||z||^2
    # constant is dropped. esq_ref holds 0.5 * ||e_k||^2 as a (1, K) row.
    score = esq_ref[...] - cross                                         # (TN, K)

    # First-occurrence argmin (same tie-break as torch.argmin).
    # NOTE: like the original kernel, a NaN row would yield index K (all-zero one-hot).
    min_s = jnp.min(score, axis=1, keepdims=True)                        # (TN, 1)
    lane = lax.broadcasted_iota(jnp.int32, score.shape, 1)               # (TN, K)
    idx_col = jnp.min(jnp.where(score == min_s, lane, K),
                      axis=1, keepdims=True)                             # (TN, 1)

    onehot = (lane == idx_col).astype(jnp.float32)                       # (TN, K)

    # Quantize: one-hot row-select of the codebook (exact codebook rows).
    q = lax.dot_general(onehot, e, (((1,), (0,)), ((), ())),
                        preferred_element_type=jnp.float32)              # (TN, D)
    q_ref[...] = q.astype(q_ref.dtype)

    # Lane-dense (1, TN) index row: contract the one-hot against hi/lo code ids
    # (all values <= 255, exact in bf16), avoiding a sublane->lane relayout of idx_col.
    hl = lax.dot_general(khl_ref[...].astype(jnp.bfloat16),
                         onehot.astype(jnp.bfloat16),
                         (((1,), (1,)), ((), ())),
                         preferred_element_type=jnp.float32)             # (2, TN)
    idx_row = (hl[0:1, :] * 256.0 + hl[1:2, :]).astype(jnp.int32)        # (1, TN)
    idx_ref[...] = idx_row.reshape(1, 1, tile_n)

    # Per-tile SSE partial for vq_loss (padded rows masked out).
    diff = q - z
    if n_valid != n_padded:
        row = lax.broadcasted_iota(jnp.int32, (tile_n, 1), 0) + i * tile_n
        diff = jnp.where(row < n_valid, diff, 0.0)
    ssd_ref[...] = jnp.sum(diff * diff).reshape(1, 1, 1)


def vector_quantizer_ema_forward(z, embedding, *, cross_dtype=jnp.bfloat16):
    """Eval-mode forward of VectorQuantizerEMA.

    Returns (quantized_st, encoding_indices, vq_loss) matching the PyTorch module's
    forward values (straight-through only changes gradients). Use
    cross_dtype=jnp.float32 for bit-parity with the f32 torch argmin; bf16 (default)
    is faster on the MXU and may flip near-tie indices.
    """
    embedding = embedding.astype(jnp.float32)
    K, D = embedding.shape
    orig_shape = z.shape
    assert orig_shape[-1] == D, "embedding_dim must be the last axis of z"
    N = int(np.prod(orig_shape[:-1]))
    out_dtype = z.dtype

    flat_z = z.reshape(N, D)
    TN = _choose_tile_rows(N, K, D)
    num_tiles = pl.cdiv(N, TN)
    N_pad = num_tiles * TN
    if N_pad != N:
        flat_z = jnp.pad(flat_z, ((0, N_pad - N), (0, 0)))

    # Hoisted per-codebook constants (resident across the whole grid).
    e_sq_half = 0.5 * jnp.sum(embedding * embedding, axis=1)[None, :]     # (1, K)
    k_ids = jnp.arange(K, dtype=jnp.int32)
    khl = jnp.stack([k_ids // 256, k_ids % 256]).astype(jnp.float32)      # (2, K)

    kernel = functools.partial(
        _vq_kernel,
        n_valid=N, tile_n=TN, n_padded=N_pad,
        cross_dtype=jnp.dtype(cross_dtype))

    q_pad, idx_tiles, ssd_tiles = pl.pallas_call(
        kernel,
        out_shape=(
            jax.ShapeDtypeStruct((N_pad, D), out_dtype),
            jax.ShapeDtypeStruct((num_tiles, 1, TN), jnp.int32),
            jax.ShapeDtypeStruct((num_tiles, 1, 1), jnp.float32),
        ),
        grid_spec=pltpu.PrefetchScalarGridSpec(
            num_scalar_prefetch=0,
            grid=(num_tiles,),
            in_specs=[
                pl.BlockSpec((TN, D), lambda i: (i, 0)),      # z tile
                pl.BlockSpec((K, D), lambda i: (0, 0)),       # codebook (resident)
                pl.BlockSpec((1, K), lambda i: (0, 0)),       # 0.5 * ||e||^2 (resident)
                pl.BlockSpec((2, K), lambda i: (0, 0)),       # hi/lo code ids (resident)
            ],
            out_specs=[
                pl.BlockSpec((TN, D), lambda i: (i, 0)),      # quantized tile
                pl.BlockSpec((1, 1, TN), lambda i: (i, 0, 0)),  # lane-dense index row
                pl.BlockSpec((1, 1, 1), lambda i: (i, 0, 0)),   # per-tile SSE partial
            ],
        ),
        compiler_params=pltpu.CompilerParams(
            dimension_semantics=("parallel",),
            vmem_limit_bytes=48 * 1024 * 1024,
        ),
        cost_estimate=pl.CostEstimate(
            flops=4 * N_pad * K * D,
            transcendentals=0,
            bytes_accessed=2 * N_pad * D * flat_z.dtype.itemsize
            + N_pad * 4 + K * D * 4 + 3 * K * 4,
        ),
    )(flat_z, embedding, e_sq_half, khl)

    quantized = q_pad[:N].reshape(orig_shape)
    encoding_indices = idx_tiles.reshape(N_pad)[:N].reshape(orig_shape[:-1])
    mean_sq = jnp.sum(ssd_tiles) / (N * D)
    # e_latent_loss + q_latent_loss: identical forward values (detach affects grads only).
    vq_loss = 2.0 * mean_sq
    quantized_st = quantized  # forward value of z + (quantized - z).detach()
    # TODO(synk): training-mode EMA buffer updates (cluster_size, ema_w, embedding copy)
    # are in-place nn buffer mutations in PyTorch; not reproduced in this eval-mode kernel.
    return quantized_st, encoding_indices, vq_loss


def _reference_forward(z, embedding, cross_dtype=jnp.float32):
    """Pure-JAX mirror of the PyTorch forward; cross_dtype selects the matmul numerics."""
    K, D = embedding.shape
    e = embedding.astype(jnp.float32)
    flat_z = z.reshape(-1, D).astype(jnp.float32)
    cd = jnp.dtype(cross_dtype)
    cross = jnp.dot(flat_z.astype(cd), e.astype(cd).T,
                    preferred_element_type=jnp.float32,
                    precision=lax.Precision.HIGHEST)
    dist = (jnp.sum(flat_z ** 2, axis=1, keepdims=True)
            + jnp.sum(e ** 2, axis=1) - 2.0 * cross)
    idx = jnp.argmin(dist, axis=1)
    q = e[idx].reshape(z.shape)
    loss = 2.0 * jnp.mean((q - z.astype(jnp.float32)) ** 2)
    return q.astype(z.dtype), idx.reshape(z.shape[:-1]), loss


if __name__ == "__main__":
    codebook_size = 128   # K
    embedding_dim = 32    # D
    B, H, W = 2, 8, 8     # z: (B, H, W, D) channels-last; N = B*H*W = 128

    key = jax.random.PRNGKey(0)
    k_emb, k_z = jax.random.split(key)
    # nn.init.uniform_(embedding.weight, -1/K, 1/K)
    embedding = jax.random.uniform(
        k_emb, (codebook_size, embedding_dim), jnp.float32,
        minval=-1.0 / codebook_size, maxval=1.0 / codebook_size)
    z = jax.random.normal(k_z, (B, H, W, embedding_dim), jnp.float32) * 0.05

    # Fast path: bf16 operands into the MXU for the distance cross-term.
    q_bf, idx_bf, loss_bf = vector_quantizer_ema_forward(z, embedding)
    jax.block_until_ready((q_bf, idx_bf, loss_bf))
    q_r, idx_r, loss_r = _reference_forward(z, embedding, cross_dtype=jnp.bfloat16)
    assert jnp.array_equal(idx_bf, idx_r.astype(idx_bf.dtype))
    assert jnp.allclose(q_bf, q_r, atol=1e-5, rtol=1e-5)
    assert jnp.allclose(loss_bf, loss_r, atol=1e-6, rtol=1e-5)

    # Strict path: f32 distances, parity with the torch-style f32 argmin.
    q_f, idx_f, loss_f = vector_quantizer_ema_forward(
        z, embedding, cross_dtype=jnp.float32)
    jax.block_until_ready((q_f, idx_f, loss_f))
    q_r32, idx_r32, loss_r32 = _reference_forward(z, embedding, cross_dtype=jnp.float32)
    assert jnp.array_equal(idx_f, idx_r32.astype(idx_f.dtype))
    assert jnp.allclose(q_f, q_r32, atol=1e-5, rtol=1e-5)
    assert jnp.allclose(loss_f, loss_r32, atol=1e-6, rtol=1e-5)

    print("KERNEL_OK")
</pallas_src>

<mosaic_0001>
module attributes {stable_mosaic.version = 11 : i64} {
  func.func @_vq_kernel(%arg0: i32, %arg1: memref<128x32xf32, #tpu.memory_space<vmem>>, %arg2: memref<128x32xf32, #tpu.memory_space<vmem>>, %arg3: memref<1x128xf32, #tpu.memory_space<vmem>>, %arg4: memref<2x128xf32, #tpu.memory_space<vmem>>, %arg5: memref<128x32xf32, #tpu.memory_space<vmem>>, %arg6: memref<1x1x128xi32, #tpu.memory_space<vmem>>, %arg7: memref<1x1x1xf32, #tpu.memory_space<vmem>>) attributes {dimension_semantics = [#tpu.dimension_semantics<parallel>], iteration_bounds = array<i64: 1>, scalar_prefetch = 0 : i64, scratch_operands = 0 : i64, tpu.core_type = #tpu.core_type<tc>, window_params = [{transform_indices = @transform_0, window_bounds = array<i64: 128, 32>}, {pipeline_mode = #tpu.pipeline_mode<synchronous>, transform_indices = @transform_1, window_bounds = array<i64: 128, 32>}, {pipeline_mode = #tpu.pipeline_mode<synchronous>, transform_indices = @transform_2, window_bounds = array<i64: 1, 128>}, {pipeline_mode = #tpu.pipeline_mode<synchronous>, transform_indices = @transform_3, window_bounds = array<i64: 2, 128>}, {transform_indices = @transform_4, window_bounds = array<i64: 128, 32>}, {transform_indices = @transform_5, window_bounds = array<i64: 1, 1, 128>}, {transform_indices = @transform_6, window_bounds = array<i64: 1, 1, 1>}]} {
    %c0 = arith.constant 0 : index
    %c0_0 = arith.constant 0 : index
    %0 = vector.load %arg1[%c0, %c0_0] : memref<128x32xf32, #tpu.memory_space<vmem>>, vector<128x32xf32>
    %c0_1 = arith.constant 0 : index
    %c0_2 = arith.constant 0 : index
    %1 = vector.load %arg2[%c0_1, %c0_2] : memref<128x32xf32, #tpu.memory_space<vmem>>, vector<128x32xf32>
    %2 = arith.truncf %0 : vector<128x32xf32> to vector<128x32xbf16>
    %3 = arith.truncf %1 : vector<128x32xf32> to vector<128x32xbf16>
    %cst = arith.constant dense<0.000000e+00> : vector<128x128xf32>
    %4 = tpu.matmul %2, %3, %cst {dimension_numbers = #tpu.dot_dimension_numbers<[1], [1], [0], [0], [0, 0, 1, 0], [], []>} : vector<128x32xbf16>, vector<128x32xbf16>, vector<128x128xf32> -> vector<128x128xf32>
    %c0_3 = arith.constant 0 : index
    %c0_4 = arith.constant 0 : index
    %5 = vector.load %arg3[%c0_3, %c0_4] : memref<1x128xf32, #tpu.memory_space<vmem>>, vector<1x128xf32>
    %6 = vector.broadcast %5 : vector<1x128xf32> to vector<128x128xf32>
    %7 = arith.subf %6, %4 : vector<128x128xf32>
    %cst_5 = arith.constant dense<0x7F800000> : vector<128xf32>
    %8 = vector.multi_reduction <minimumf>, %7, %cst_5 [1] : vector<128x128xf32> to vector<128xf32>
    %9 = vector.shape_cast %8 : vector<128xf32> to vector<128x1xf32>
    %10 = tpu.iota {dimensions = array<i32: 1>} : vector<128x128xi32>
    %11 = vector.broadcast %9 : vector<128x1xf32> to vector<128x128xf32>
    %12 = arith.cmpf oeq, %7, %11 : vector<128x128xf32>
    %c128_i32 = arith.constant 128 : i32
    %13 = vector.broadcast %c128_i32 : i32 to vector<128x128xi32>
    %14 = arith.select %12, %10, %13 : vector<128x128xi1>, vector<128x128xi32>
    %cst_6 = arith.constant dense<2147483647> : vector<128xi32>
    %15 = vector.multi_reduction <minsi>, %14, %cst_6 [1] : vector<128x128xi32> to vector<128xi32>
    %16 = vector.shape_cast %15 : vector<128xi32> to vector<128x1xi32>
    %17 = vector.broadcast %16 : vector<128x1xi32> to vector<128x128xi32>
    %18 = arith.cmpi eq, %10, %17 : vector<128x128xi32>
    %19 = arith.extui %18 : vector<128x128xi1> to vector<128x128xi32>
    %20 = arith.sitofp %19 : vector<128x128xi32> to vector<128x128xf32>
    %cst_7 = arith.constant dense<0.000000e+00> : vector<128x32xf32>
    %21 = tpu.matmul %20, %1, %cst_7 {dimension_numbers = #tpu.dot_dimension_numbers<[1], [0], [0], [1], [0, 0, 1, 1], [], []>} : vector<128x128xf32>, vector<128x32xf32>, vector<128x32xf32> -> vector<128x32xf32>
    %c0_8 = arith.constant 0 : index
    %c0_9 = arith.constant 0 : index
    %22 = vector.load %arg5[%c0_8, %c0_9] : memref<128x32xf32, #tpu.memory_space<vmem>>, vector<128x32xf32>
    tpu.vector_store %arg5[%c0_8, %c0_9], %21 {strides = array<i32>} : memref<128x32xf32, #tpu.memory_space<vmem>>, vector<128x32xf32>,
    %c0_10 = arith.constant 0 : index
    %c0_11 = arith.constant 0 : index
    %23 = vector.load %arg4[%c0_10, %c0_11] : memref<2x128xf32, #tpu.memory_space<vmem>>, vector<2x128xf32>
    %24 = arith.truncf %23 : vector<2x128xf32> to vector<2x128xbf16>
    %25 = arith.truncf %20 : vector<128x128xf32> to vector<128x128xbf16>
    %cst_12 = arith.constant dense<0.000000e+00> : vector<2x128xf32>
    %26 = tpu.matmul %24, %25, %cst_12 {dimension_numbers = #tpu.dot_dimension_numbers<[1], [1], [0], [0], [0, 0, 1, 0], [], []>} : vector<2x128xbf16>, vector<128x128xbf16>, vector<2x128xf32> -> vector<2x128xf32>
    %27 = vector.extract_strided_slice %26 {offsets = [0, 0], sizes = [1, 128], strides = [1, 1]} : vector<2x128xf32> to vector<1x128xf32>
    %cst_13 = arith.constant 2.560000e+02 : f32
    %28 = vector.broadcast %cst_13 : f32 to vector<1x128xf32>
    %29 = arith.mulf %27, %28 : vector<1x128xf32>
    %30 = vector.extract_strided_slice %26 {offsets = [1, 0], sizes = [1, 128], strides = [1, 1]} : vector<2x128xf32> to vector<1x128xf32>
    %31 = arith.addf %29, %30 : vector<1x128xf32>
    %32 = arith.fptosi %31 : vector<1x128xf32> to vector<1x128xi32>
    %33 = vector.shape_cast %32 : vector<1x128xi32> to vector<1x1x128xi32>
    %c0_14 = arith.constant 0 : index
    %c0_15 = arith.constant 0 : index
    %c0_16 = arith.constant 0 : index
    %34 = vector.load %arg6[%c0_14, %c0_15, %c0_16] : memref<1x1x128xi32, #tpu.memory_space<vmem>>, vector<1x1x128xi32>
    tpu.vector_store %arg6[%c0_14, %c0_15, %c0_16], %33 {strides = array<i32>} : memref<1x1x128xi32, #tpu.memory_space<vmem>>, vector<1x1x128xi32>,
    %35 = arith.subf %21, %0 : vector<128x32xf32>
    %36 = arith.mulf %35, %35 : vector<128x32xf32>
    %37 = vector.shape_cast %36 : vector<128x32xf32> to vector<1x128x32xf32>
    %cst_17 = arith.constant dense<0.000000e+00> : vector<1xf32>
    %38 = vector.multi_reduction <add>, %37, %cst_17 [1, 2] : vector<1x128x32xf32> to vector<1xf32>
    %39 = vector.shape_cast %38 : vector<1xf32> to vector<1x1x1xf32>
    %40 = vector.extract %39[0, 0, 0] : f32 from vector<1x1x1xf32>
    %41 = vector.broadcast %40 : f32 to vector<1x1x1xf32>
    %c0_18 = arith.constant 0 : index
    %c0_19 = arith.constant 0 : index
    %c0_20 = arith.constant 0 : index
    %42 = vector.load %arg7[%c0_18, %c0_19, %c0_20] : memref<1x1x1xf32, #tpu.memory_space<vmem>>, vector<1x1x1xf32>
    tpu.vector_store %arg7[%c0_18, %c0_19, %c0_20], %41 {strides = array<i32>} : memref<1x1x1xf32, #tpu.memory_space<vmem>>, vector<1x1x1xf32>,
    return
  }
  func.func @transform_0(%arg0: i32) -> (i32, i32) {
    %c0_i32 = arith.constant 0 : i32
    %c0_i32_0 = arith.constant 0 : i32
    return %arg0, %c0_i32 : i32, i32
  }
  func.func @transform_1(%arg0: i32) -> (i32, i32) {
    %c0_i32 = arith.constant 0 : i32
    %c0_i32_0 = arith.constant 0 : i32
    %c0_i32_1 = arith.constant 0 : i32
    return %c0_i32, %c0_i32_0 : i32, i32
  }
  func.func @transform_2(%arg0: i32) -> (i32, i32) {
    %c0_i32 = arith.constant 0 : i32
    %c0_i32_0 = arith.constant 0 : i32
    %c0_i32_1 = arith.constant 0 : i32
    return %c0_i32, %c0_i32_0 : i32, i32
  }
  func.func @transform_3(%arg0: i32) -> (i32, i32) {
    %c0_i32 = arith.constant 0 : i32
    %c0_i32_0 = arith.constant 0 : i32
    %c0_i32_1 = arith.constant 0 : i32
    return %c0_i32, %c0_i32_0 : i32, i32
  }
  func.func @transform_4(%arg0: i32) -> (i32, i32) {
    %c0_i32 = arith.constant 0 : i32
    %c0_i32_0 = arith.constant 0 : i32
    return %arg0, %c0_i32 : i32, i32
  }
  func.func @transform_5(%arg0: i32) -> (i32, i32, i32) {
    %c0_i32 = arith.constant 0 : i32
    %c0_i32_0 = arith.constant 0 : i32
    %c0_i32_1 = arith.constant 0 : i32
    return %arg0, %c0_i32, %c0_i32_0 : i32, i32, i32
  }
  func.func @transform_6(%arg0: i32) -> (i32, i32, i32) {
    %c0_i32 = arith.constant 0 : i32
    %c0_i32_0 = arith.constant 0 : i32
    %c0_i32_1 = arith.constant 0 : i32
    return %arg0, %c0_i32, %c0_i32_0 : i32, i32, i32
  }
}

</mosaic_0001>

<bundles_post_ra>
// kernel: tpu_custom_call.1
= control target key start
LH: loop header
LB: loop body
LE: loop exit
PB: predicated region body
PF: predicated region fallthrough
CT: control target
= control target key end

     0   :  { %12 = vsyncpa [#allocation3], 0  ;;  %vm71_vm0 = vcmask 261120   ;;  %s1859_s0 = inlined_call_operand.vmem [shape: f32[128,32], index: 0, kind: input, shape index: {}]   ;;  %s1860_s1 = inlined_call_operand.vmem [shape: f32[128,32], index: 1, kind: input, shape index: {}]   ;;  %s1861_s2 = inlined_call_operand.vmem [shape: f32[1,128], index: 2, kind: input, shape index: {}]   ;;  %s1862_s3 = inlined_call_operand.vmem [shape: f32[2,128], index: 3, kind: input, shape index: {}]   ;;  %s1863_s4 = inlined_call_operand.vmem [shape: f32[128,32], index: 4, kind: output, shape index: {0}]   ;;  %s1864_s5 = inlined_call_operand.hbm [shape: s32[1,1,128], index: 5, kind: output, shape index: {1}]   ;;  %s1865_s6 = inlined_call_operand.hbm [shape: f32[1,1,1], index: 6, kind: output, shape index: {2}]  }
   0x1   :  { %v53_v0 = vld [vmem:[%s1860_s1 + $0x70] sm:$0xff]  ;;  %v54_v1 = vld [vmem:[%s1860_s1 + $0x78] sm:$0xff]  ;;  %v51_v2 = vld [vmem:[%s1860_s1 + $0x60] sm:$0xff] }
   0x2   :  { %v70_v3 = vpack.c.bf16 %v54_v1, %v53_v0  ;;  %v52_v4 = vld [vmem:[%s1860_s1 + $0x68] sm:$0xff]  ;;  %1049 = vmatprep.subr.mxu1 %v54_v1  ;;  %v1246_v7 = vld [vmem:[%s1859_s0] sm:$0xff]  ;;  %v49_v9 = vld [vmem:[%s1860_s1 + $0x50] sm:$0xff] }
   0x3   :  { %v69_v5 = vpack.c.bf16 %v52_v4, %v51_v2  ;;  %1050 = vmatpush3.msra.mxu1 %v54_v1  ;;  %v1251_v8 = vld [vmem:[%s1859_s0 + $0x8] sm:$0xff]  ;;  %v50_v10 = vld [vmem:[%s1860_s1 + $0x58] sm:$0xff] }
   0x4   :  { %1125 = vmatprep.subr.msk.bf16.mxu0 %vm71_vm0, %v70_v3  ;;  %v118_v6 = vsel %vm71_vm0, %v70_v3, 0  ;;  %1051 = vmatprep.subr.mxu1 %v53_v0  ;;  %v55_v11 = vpack.c.bf16 %v1251_v8, %v1246_v7  ;;  %v68_v13 = vpack.c.bf16 %v50_v10, %v49_v9 }
   0x5   :  { %1018 = vmatpush3.bf16.xpose.msra.mxu0 %v118_v6  ;;  %1052 = vmatpush3.msra.mxu1 %v53_v0  ;;  %v115_v12 = vsel %vm71_vm0, %v69_v5, 0 }
   0x6   :  { %1126 = vmatprep.subr.msk.bf16.mxu0 %vm71_vm0, %v69_v5  ;;  %1053 = vmatprep.subr.mxu1 %v52_v4 }
   0x7   :  { %1054 = vmatpush3.msra.mxu1 %v52_v4  ;;  %1033 = vmatprep.mubr.msk.bf16.mxu0 %vm71_vm0, %v55_v11 }
   0x8   :  { %1055 = vmatprep.subr.mxu1 %v51_v2 }
   0x9   :  { %1056 = vmatpush3.msra.mxu1 %v51_v2 }
   0xa   :  { %1057 = vmatprep.subr.mxu1 %v50_v10 }
   0xb   :  { %1058 = vmatpush3.msra.mxu1 %v50_v10 }
   0xc   :  { %13 = vsyncpa [#allocation5], 0  ;;  %1059 = vmatprep.subr.mxu1 %v49_v9  ;;  %v48_v14 = vld [vmem:[%s1860_s1 + $0x48] sm:$0xff]  ;;  %v47_v15 = vld [vmem:[%s1860_s1 + $0x40] sm:$0xff]  ;;  %v112_v17 = vsel %vm71_vm0, %v68_v13, 0 }
   0xd   :  { %1020 = vmatpush3.bf16.xpose.msra.mxu0 %v115_v12  ;;  %1060 = vmatpush3.msra.mxu1 %v49_v9  ;;  %v46_v16 = vld [vmem:[%s1860_s1 + $0x38] sm:$0xff]  ;;  %v67_v18 = vpack.c.bf16 %v48_v14, %v47_v15  ;;  %v45_v19 = vld [vmem:[%s1860_s1 + $0x30] sm:$0xff]  ;;  %v44_v20 = vld [vmem:[%s1860_s1 + $0x28] sm:$0xff] }
   0xe   :  { %1127 = vmatprep.subr.msk.bf16.mxu0 %vm71_vm0, %v68_v13  ;;  %1061 = vmatprep.subr.mxu1 %v48_v14  ;;  %v43_v21 = vld [vmem:[%s1860_s1 + $0x20] sm:$0xff]  ;;  %v42_v22 = vld [vmem:[%s1860_s1 + $0x18] sm:$0xff]  ;;  %v66_v24 = vpack.c.bf16 %v46_v16, %v45_v19  ;;  %v41_v25 = vld [vmem:[%s1860_s1 + $0x10] sm:$0xff] }
   0xf   :  { %1062 = vmatpush3.msra.mxu1 %v48_v14  ;;  %v109_v23 = vsel %vm71_vm0, %v67_v18, 0  ;;  %v40_v26 = vld [vmem:[%s1860_s1 + $0x8] sm:$0xff]  ;;  %v39_v27 = vld [vmem:[%s1860_s1] sm:$0xff]  ;;  %v65_v29 = vpack.c.bf16 %v44_v20, %v43_v21  ;;  %v64_v31 = vpack.c.bf16 %v42_v22, %v41_v25  ;;  %v1308_v35 = vld [vmem:[%s1859_s0 + $0x10] sm:$0xff] }
  0x10   :  { %1063 = vmatprep.subr.mxu1 %v47_v15  ;;  %v106_v28 = vsel %vm71_vm0, %v66_v24, 0  ;;  %v63_v33 = vpack.c.bf16 %v40_v26, %v39_v27  ;;  %v1313_v36 = vld [vmem:[%s1859_s0 + $0x18] sm:$0xff]  ;;  %v1318_v37 = vld [vmem:[%s1859_s0 + $0x20] sm:$0xff]  ;;  %v1323_v38 = vld [vmem:[%s1859_s0 + $0x28] sm:$0xff] }
  0x11   :  { %1064 = vmatpush3.msra.mxu1 %v47_v15  ;;  %v103_v30 = vsel %vm71_vm0, %v65_v29, 0  ;;  %v100_v32 = vsel %vm71_vm0, %v64_v31, 0  ;;  %v56_v39 = vpack.c.bf16 %v1313_v36, %v1308_v35  ;;  %v57_v40 = vpack.c.bf16 %v1323_v38, %v1318_v37  ;;  %v1334_v41 = vld [vmem:[%s1859_s0 + $0x30] sm:$0xff]  ;;  %v1339_v42 = vld [vmem:[%s1859_s0 + $0x38] sm:$0xff]  ;;  %v1344_v43 = vld [vmem:[%s1859_s0 + $0x40] sm:$0xff] }
  0x12   :  { %1065 = vmatprep.subr.mxu1 %v46_v16  ;;  %v97_v34 = vsel %vm71_vm0, %v63_v33, 0  ;;  %v1349_v44 = vld [vmem:[%s1859_s0 + $0x48] sm:$0xff]  ;;  %v58_v45 = vpack.c.bf16 %v1339_v42, %v1334_v41  ;;  %v1360_v47 = vld [vmem:[%s1859_s0 + $0x50] sm:$0xff]  ;;  %v1365_v48 = vld [vmem:[%s1859_s0 + $0x58] sm:$0xff] }
  0x13   :  { %1066 = vmatpush3.msra.mxu1 %v46_v16  ;;  %v59_v46 = vpack.c.bf16 %v1349_v44, %v1344_v43  ;;  %v1370_v49 = vld [vmem:[%s1859_s0 + $0x60] sm:$0xff]  ;;  %v1375_v50 = vld [vmem:[%s1859_s0 + $0x68] sm:$0xff]  ;;  %v60_v51 = vpack.c.bf16 %v1365_v48, %v1360_v47  ;;  %v1386_v53 = vld [vmem:[%s1859_s0 + $0x70] sm:$0xff] }
  0x14   :  { %1067 = vmatprep.subr.mxu1 %v45_v19  ;;  %v61_v52 = vpack.c.bf16 %v1375_v50, %v1370_v49  ;;  %v1391_v54 = vld [vmem:[%s1859_s0 + $0x78] sm:$0xff]  ;;  %v911_v56 = vld [vmem:[%s1861_s2] ss:$0 sm:$0xff] }
  0x15   :  { %1022 = vmatpush3.bf16.xpose.msra.mxu0 %v112_v17  ;;  %1068 = vmatpush3.msra.mxu1 %v45_v19  ;;  %v62_v55 = vpack.c.bf16 %v1391_v54, %v1386_v53 }
  0x16   :  { %1128 = vmatprep.subr.msk.bf16.mxu0 %vm71_vm0, %v67_v18  ;;  %1069 = vmatprep.subr.mxu1 %v44_v20 }
  0x17   :  { %1070 = vmatpush3.msra.mxu1 %v44_v20 }
  0x18   :  { %1071 = vmatprep.subr.mxu1 %v43_v21 }
  0x19   :  { %1072 = vmatpush3.msra.mxu1 %v43_v21 }
  0x1a   :  { %1073 = vmatprep.subr.mxu1 %v42_v22 }
  0x1b   :  { %1074 = vmatpush3.msra.mxu1 %v42_v22 }
  0x1c   :  { %1075 = vmatprep.subr.mxu1 %v41_v25 }
  0x1d   :  { %1024 = vmatpush3.bf16.xpose.msra.mxu0 %v109_v23  ;;  %1076 = vmatpush3.msra.mxu1 %v41_v25 }
  0x1e   :  { %1129 = vmatprep.subr.msk.bf16.mxu0 %vm71_vm0, %v66_v24  ;;  %1077 = vmatprep.subr.mxu1 %v40_v26 }
  0x1f   :  { %1078 = vmatpush3.msra.mxu1 %v40_v26 }
  0x20   :  { %1079 = vmatprep.subr.mxu1 %v39_v27 }
  0x21   :  { %1080 = vmatpush3.msra.mxu1 %v39_v27  ;;  %v272_v27 = vlaneseq }
  0x25   :  { %1026 = vmatpush3.bf16.xpose.msra.mxu0 %v106_v28  ;;  %v1432_v28 = vand.u32 127, %v272_v27 }
  0x26   :  { %1130 = vmatprep.subr.msk.bf16.mxu0 %vm71_vm0, %v65_v29 }
  0x2d   :  { %1028 = vmatpush3.bf16.xpose.msra.mxu0 %v103_v30 }
  0x2e   :  { %1131 = vmatprep.subr.msk.bf16.mxu0 %vm71_vm0, %v64_v31 }
  0x35   :  { %1030 = vmatpush3.bf16.xpose.msra.mxu0 %v100_v32 }
  0x36   :  { %1132 = vmatprep.subr.msk.bf16.mxu0 %vm71_vm0, %v63_v33 }
  0x3d   :  { %1032 = vmatpush3.bf16.xpose.msra.mxu0 %v97_v34 }
  0x44   :  { %1034 = vmatmul.mubr.msk.bf16.vlgmr.msra.gmra.mxu0 %vm71_vm0, %v56_v39 }
  0x45   :  { %1037 = vmatprep.mubr.msk.bf16.mxu0 %vm71_vm0, %v57_v40 }
  0x4c   :  { %1038 = vmatmul.mubr.msk.bf16.gmra.mxu0 %vm71_vm0, %v58_v45 }
  0x4d   :  { %1041 = vmatprep.mubr.msk.bf16.mxu0 %vm71_vm0, %v59_v46 }
  0x54   :  { %1042 = vmatmul.mubr.msk.bf16.gmra.mxu0 %vm71_vm0, %v60_v51 }
  0x55   :  { %1045 = vmatprep.mubr.msk.bf16.mxu0 %vm71_vm0, %v61_v52 }
  0x5c   :  { %1046 = vmatmul.mubr.msk.bf16.gmra.mxu0 %vm71_vm0, %v62_v55 }
 0x104   :  { %v1035_v57 = vpop.f32.mrf.mxu0 }
 0x105   :  { %v226_v58 = vsub.f32 %v911_v56, %v1035_v57 }
 0x106   :  { %v154_v59 = vpop.f32.mrf.mxu0 }
 0x107   :  { %v224_v60 = vsub.f32 %v911_v56, %v154_v59  ;;  %244 = vmin.xlane.f32.xlu1 %v226_v58 }
 0x108   :  { %v1036_v61 = vpop.f32.mrf.mxu0 }
 0x109   :  { %v227_v62 = vsub.f32 %v911_v56, %v1036_v61  ;;  %240 = vmin.xlane.f32.xlu0 %v224_v60 }
 0x10a   :  { %v157_v63 = vpop.f32.mrf.mxu0 }
 0x10b   :  { %v225_v0 = vsub.f32 %v911_v56, %v157_v63  ;;  %246 = vmin.xlane.f32.xlu1 %v227_v62 }
 0x10c   :  { %v1039_v1 = vpop.f32.mrf.mxu0 }
 0x10d   :  { %242 = vmin.xlane.f32.xlu0 %v225_v0  ;;  %v1399_v6 = vsub.f32 %v911_v56, %v1039_v1 }
 0x10e   :  { %v170_v2 = vpop.f32.mrf.mxu0 }
 0x10f   :  { %v228_v3 = vsub.f32 %v911_v56, %v170_v2 }
 0x110   :  { %v1040_v4 = vpop.f32.mrf.mxu0 }
 0x111   :  { %248 = vmin.xlane.f32.xlu0 %v228_v3  ;;  %v1405_v12 = vsub.f32 %v911_v56, %v1040_v4 }
 0x112   :  { %v173_v5 = vpop.f32.mrf.mxu0 }
 0x113   :  { %v1401_v9 = vsub.f32 %v911_v56, %v173_v5 }
 0x114   :  { %v1043_v10 = vpop.f32.mrf.mxu0 }
 0x115   :  { %252 = vmin.xlane.f32.xlu0 %v1399_v6  ;;  %250 = vmin.xlane.f32.xlu1 %v1401_v9  ;;  %v1411_v16 = vsub.f32 %v911_v56, %v1043_v10 }
 0x116   :  { %v186_v11 = vpop.f32.mrf.mxu0 }
 0x117   :  { %v1407_v13 = vsub.f32 %v911_v56, %v186_v11 }
 0x118   :  { %v1044_v14 = vpop.f32.mrf.mxu0 }
 0x119   :  { %254 = vmin.xlane.f32.xlu1 %v1405_v12  ;;  %256 = vmin.xlane.f32.xlu0 %v1407_v13  ;;  %v1417_v20 = vsub.f32 %v911_v56, %v1044_v14 }
 0x11a   :  { %v189_v15 = vpop.f32.mrf.mxu0 }
 0x11b   :  { %v1413_v17 = vsub.f32 %v911_v56, %v189_v15 }
 0x11c   :  { %v1047_v18 = vpop.f32.mrf.mxu0 }
 0x11d   :  { %260 = vmin.xlane.f32.xlu0 %v1411_v16  ;;  %258 = vmin.xlane.f32.xlu1 %v1413_v17  ;;  %v1423_v24 = vsub.f32 %v911_v56, %v1047_v18 }
 0x11e   :  { %v202_v19 = vpop.f32.mrf.mxu0 }
 0x11f   :  { %v1419_v21 = vsub.f32 %v911_v56, %v202_v19 }
 0x120   :  { %v1048_v22 = vpop.f32.mrf.mxu0 }
 0x121   :  { %262 = vmin.xlane.f32.xlu1 %v1417_v20  ;;  %264 = vmin.xlane.f32.xlu0 %v1419_v21  ;;  %v1429_v26 = vsub.f32 %v911_v56, %v1048_v22 }
 0x122   :  { %v205_v23 = vpop.f32.mrf.mxu0 }
 0x123   :  { %v1425_v25 = vsub.f32 %v911_v56, %v205_v23 }
 0x125   :  { %268 = vmin.xlane.f32.xlu0 %v1423_v24  ;;  %266 = vmin.xlane.f32.xlu1 %v1425_v25 }
 0x129   :  { %270 = vmin.xlane.f32.xlu1 %v1429_v26 }
 0x190   :  { %v245_v29 = vpop.xlane.xlu1 %244 }
 0x191   :  { %vm276_vm1 = vcmp.eq.f32.partialorder %v226_v58, %v245_v29 }
 0x192   :  { %v241_v30 = vpop.xlane.xlu0 %240  ;;  %v1435_v31 = vsel %vm276_vm1, %v1432_v28, 128 }
 0x193   :  { %vm274_vm2 = vcmp.eq.f32.partialorder %v224_v60, %v241_v30  ;;  %v335_v45 = vshra.s32 %v1435_v31, 16 }
 0x194   :  { %v1438_v32 = vsel %vm274_vm2, %v1432_v28, 128  ;;  %v247_v33 = vpop.xlane.xlu1 %246 }
 0x195   :  { %vm277_vm3 = vcmp.eq.f32.partialorder %v227_v62, %v247_v33  ;;  %v307_v34 = vshra.s32 %v1438_v32, 16  ;;  %v1452_v56 = vcvt.s32.f32 %v335_v45 }
 0x196   :  { %v243_v39 = vpop.xlane.xlu0 %242  ;;  %v1445_v46 = vsel %vm277_vm3, %v1432_v28, 128 }
 0x197   :  { %vm275_vm4 = vcmp.eq.f32.partialorder %v225_v0, %v243_v39  ;;  %v1441_v40 = vcvt.s32.f32 %v307_v34  ;;  %v349_v58 = vshra.s32 %v1445_v46, 16 }
 0x198   :  { %v1448_v51 = vsel %vm275_vm4, %v1432_v28, 128 }
 0x199   :  { %310 = vmin.xlane.f32.xlu0 %v1441_v40  ;;  %v321_v52 = vshra.s32 %v1448_v51, 16  ;;  %v1467_v0 = vcvt.s32.f32 %v349_v58 }
 0x19a   :  { %v249_v55 = vpop.xlane.xlu0 %248 }
 0x19b   :  { %vm278_vm5 = vcmp.eq.f32.partialorder %v228_v3, %v249_v55  ;;  %v1454_v57 = vcvt.s32.f32 %v321_v52 }
 0x19c   :  { %v1458_v59 = vsel %vm278_vm5, %v1432_v28, 128 }
 0x19d   :  { %338 = vmin.xlane.f32.xlu0 %v1452_v56  ;;  %324 = vmin.xlane.f32.xlu1 %v1454_v57  ;;  %v363_v60 = vshra.s32 %v1458_v59, 16 }
 0x19e   :  { %v253_v61 = vpop.xlane.xlu0 %252  ;;  %v251_v62 = vpop.xlane.xlu1 %250 }
 0x19f   :  { %vm280_vm6 = vcmp.eq.f32.partialorder %v1399_v6, %v253_v61  ;;  %vm279_vm7 = vcmp.eq.f32.partialorder %v1401_v9, %v251_v62  ;;  %v1465_v63 = vcvt.s32.f32 %v363_v60 }
 0x1a0   :  { %v1470_v1 = vsel %vm280_vm6, %v1432_v28, 128  ;;  %v1473_v2 = vsel %vm279_vm7, %v1432_v28, 128 }
 0x1a1   :  { %366 = vmin.xlane.f32.xlu0 %v1465_v63  ;;  %352 = vmin.xlane.f32.xlu1 %v1467_v0  ;;  %v391_v3 = vshra.s32 %v1470_v1, 16  ;;  %v377_v4 = vshra.s32 %v1473_v2, 16 }
 0x1a2   :  { %v255_v5 = vpop.xlane.xlu1 %254  ;;  %v257_v6 = vpop.xlane.xlu0 %256 }
 0x1a3   :  { %vm281_vm8 = vcmp.eq.f32.partialorder %v1405_v12, %v255_v5  ;;  %vm282_vm9 = vcmp.eq.f32.partialorder %v1407_v13, %v257_v6  ;;  %v1481_v9 = vcvt.s32.f32 %v391_v3  ;;  %v1483_v10 = vcvt.s32.f32 %v377_v4 }
 0x1a4   :  { %v1486_v11 = vsel %vm281_vm8, %v1432_v28, 128  ;;  %v1489_v14 = vsel %vm282_vm9, %v1432_v28, 128 }
 0x1a5   :  { %394 = vmin.xlane.f32.xlu0 %v1481_v9  ;;  %380 = vmin.xlane.f32.xlu1 %v1483_v10  ;;  %v419_v15 = vshra.s32 %v1489_v14, 16  ;;  %v405_v12 = vshra.s32 %v1486_v11, 16 }
 0x1a6   :  { %v261_v18 = vpop.xlane.xlu0 %260  ;;  %v259_v13 = vpop.xlane.xlu1 %258 }
 0x1a7   :  { %vm284_vm10 = vcmp.eq.f32.partialorder %v1411_v16, %v261_v18  ;;  %vm283_vm11 = vcmp.eq.f32.partialorder %v1413_v17, %v259_v13  ;;  %v1497_v19 = vcvt.s32.f32 %v419_v15  ;;  %v1499_v22 = vcvt.s32.f32 %v405_v12 }
 0x1a8   :  { %v1502_v23 = vsel %vm284_vm10, %v1432_v28, 128  ;;  %v1505_v27 = vsel %vm283_vm11, %v1432_v28, 128  ;;  %v306_v18 = vand.u32 65535, %v1438_v32  ;;  %v320_v13 = vand.u32 65535, %v1448_v51 }
 0x1a9   :  { %422 = vmin.xlane.f32.xlu0 %v1497_v19  ;;  %408 = vmin.xlane.f32.xlu1 %v1499_v22  ;;  %v447_v29 = vshra.s32 %v1502_v23, 16  ;;  %v433_v16 = vshra.s32 %v1505_v27, 16 }
 0x1aa   :  { %v263_v30 = vpop.xlane.xlu1 %262  ;;  %v265_v17 = vpop.xlane.xlu0 %264 }
 0x1ab   :  { %vm285_vm12 = vcmp.eq.f32.partialorder %v1417_v20, %v263_v30  ;;  %vm286_vm13 = vcmp.eq.f32.partialorder %v1419_v21, %v265_v17  ;;  %v1513_v33 = vcvt.s32.f32 %v447_v29  ;;  %v1515_v34 = vcvt.s32.f32 %v433_v16 }
 0x1ac   :  { %v1518_v39 = vsel %vm285_vm12, %v1432_v28, 128  ;;  %v1521_v45 = vsel %vm286_vm13, %v1432_v28, 128  ;;  %v308_v16 = vcvt.s32.f32 %v306_v18  ;;  %v348_v17 = vand.u32 65535, %v1445_v46 }
 0x1ad   :  { %450 = vmin.xlane.f32.xlu0 %v1513_v33  ;;  %436 = vmin.xlane.f32.xlu1 %v1515_v34  ;;  %v475_v52 = vshra.s32 %v1521_v45, 16  ;;  %v461_v20 = vshra.s32 %v1518_v39, 16  ;;  %v390_v46 = vand.u32 65535, %v1470_v1  ;;  %v404_v1 = vand.u32 65535, %v1486_v11 }
 0x1ae   :  { %v269_v55 = vpop.xlane.xlu0 %268  ;;  %v267_v21 = vpop.xlane.xlu1 %266  ;;  %v446_v11 = vand.u32 65535, %v1502_v23  ;;  %v460_v23 = vand.u32 65535, %v1518_v39 }
 0x1af   :  { %vm288_vm14 = vcmp.eq.f32.partialorder %v1423_v24, %v269_v55  ;;  %vm287_vm15 = vcmp.eq.f32.partialorder %v1425_v25, %v267_v21  ;;  %v1529_v58 = vcvt.s32.f32 %v475_v52  ;;  %v1531_v60 = vcvt.s32.f32 %v461_v20 }
 0x1b0   :  { %v1534_v61 = vsel %vm288_vm14, %v1432_v28, 128  ;;  %v1537_v62 = vsel %vm287_vm15, %v1432_v28, 128  ;;  %v362_v52 = vand.u32 65535, %v1458_v59  ;;  %v376_v59 = vand.u32 65535, %v1473_v2 }
 0x1b1   :  { %478 = vmin.xlane.f32.xlu0 %v1529_v58  ;;  %464 = vmin.xlane.f32.xlu1 %v1531_v60  ;;  %v503_v3 = vshra.s32 %v1534_v61, 16  ;;  %v489_v24 = vshra.s32 %v1537_v62, 16  ;;  %v418_v2 = vand.u32 65535, %v1489_v14  ;;  %v432_v14 = vand.u32 65535, %v1505_v27 }
 0x1b2   :  { %v271_v4 = vpop.xlane.xlu1 %270  ;;  %v474_v27 = vand.u32 65535, %v1521_v45  ;;  %v502_v39 = vand.u32 65535, %v1534_v61  ;;  %v488_v45 = vand.u32 65535, %v1537_v62 }
 0x1b3   :  { %vm289_vm1 = vcmp.eq.f32.partialorder %v1429_v26, %v271_v4  ;;  %v1544_v25 = vcvt.s32.f32 %v503_v3  ;;  %v1546_v5 = vcvt.s32.f32 %v489_v24  ;;  %v334_v26 = vand.u32 65535, %v1435_v31 }
 0x1b4   :  { %v1549_v6 = vsel %vm289_vm1, %v1432_v28, 128  ;;  %v322_v31 = vcvt.s32.f32 %v320_v13  ;;  %v364_v24 = vcvt.s32.f32 %v362_v52  ;;  %v350_v4 = vcvt.s32.f32 %v348_v17 }
 0x1b5   :  { %506 = vmin.xlane.f32.xlu0 %v1544_v25  ;;  %492 = vmin.xlane.f32.xlu1 %v1546_v5  ;;  %v517_v15 = vshra.s32 %v1549_v6, 16  ;;  %v336_v32 = vcvt.s32.f32 %v334_v26  ;;  %v392_v26 = vcvt.s32.f32 %v390_v46  ;;  %v378_v13 = vcvt.s32.f32 %v376_v59 }
 0x1b6   :  { %v420_v17 = vcvt.s32.f32 %v418_v2  ;;  %v406_v52 = vcvt.s32.f32 %v404_v1  ;;  %v516_v61 = vand.u32 65535, %v1549_v6  ;;  %v490_v1 = vcvt.s32.f32 %v488_v45 }
 0x1b7   :  { %v1554_v12 = vcvt.s32.f32 %v517_v15 }
 0x1b9   :  { %520 = vmin.xlane.f32.xlu1 %v1554_v12 }
 0x222   :  { %v1560_v29 = vpop.xlane.xlu0 %310 }
 0x223   :  { %vm312_vm2 = vcmp.eq.f32.partialorder %v1441_v40, %v1560_v29 }
 0x224   :  { %v313_v30 = vsel %vm312_vm2, %v308_v16, inf }
 0x225   :  { %314 = vmin.xlane.f32.xlu0 %v313_v30 }
 0x226   :  { %v1566_v20 = vpop.xlane.xlu0 %338  ;;  %v1568_v55 = vpop.xlane.xlu1 %324 }
 0x227   :  { %vm340_vm3 = vcmp.eq.f32.partialorder %v1452_v56, %v1566_v20  ;;  %vm326_vm4 = vcmp.eq.f32.partialorder %v1454_v57, %v1568_v55 }
 0x228   :  { %v341_v51 = vsel %vm340_vm3, %v336_v32, inf  ;;  %v327_v40 = vsel %vm326_vm4, %v322_v31, inf }
 0x229   :  { %342 = vmin.xlane.f32.xlu0 %v341_v51  ;;  %328 = vmin.xlane.f32.xlu1 %v327_v40  ;;  %v448_v51 = vcvt.s32.f32 %v446_v11  ;;  %v434_v40 = vcvt.s32.f32 %v432_v14  ;;  %v331_v11 = vcvt.f32.s32 %v1568_v55 }
 0x22a   :  { %v1576_v21 = vpop.xlane.xlu0 %366  ;;  %v1578_v3 = vpop.xlane.xlu1 %352 }
 0x22b   :  { %vm368_vm5 = vcmp.eq.f32.partialorder %v1465_v63, %v1576_v21  ;;  %vm354_vm6 = vcmp.eq.f32.partialorder %v1467_v0, %v1578_v3 }
 0x22c   :  { %v369_v56 = vsel %vm368_vm5, %v364_v24, inf  ;;  %v355_v57 = vsel %vm354_vm6, %v350_v4, inf  ;;  %v476_v24 = vcvt.s32.f32 %v474_v27  ;;  %v462_v4 = vcvt.s32.f32 %v460_v23 }
 0x22d   :  { %370 = vmin.xlane.f32.xlu0 %v369_v56  ;;  %356 = vmin.xlane.f32.xlu1 %v355_v57  ;;  %v504_v57 = vcvt.s32.f32 %v502_v39  ;;  %v332_v27 = vshll.u32 %v331_v11, 16 }
 0x22e   :  { %v1586_v15 = vpop.xlane.xlu0 %394  ;;  %v1588_v18 = vpop.xlane.xlu1 %380 }
 0x22f   :  { %vm396_vm7 = vcmp.eq.f32.partialorder %v1481_v9, %v1586_v15  ;;  %vm382_vm8 = vcmp.eq.f32.partialorder %v1483_v10, %v1588_v18 }
 0x230   :  { %v397_v63 = vsel %vm396_vm7, %v392_v26, inf  ;;  %v383_v0 = vsel %vm382_vm8, %v378_v13, inf  ;;  %v518_v26 = vcvt.s32.f32 %v516_v61  ;;  %v1187_v13 = vmov 0.0  }
 0x231   :  { %398 = vmin.xlane.f32.xlu0 %v397_v63  ;;  %384 = vmin.xlane.f32.xlu1 %v383_v0  ;;  %v345_v63 = vcvt.f32.s32 %v1566_v20 }
 0x232   :  { %v1596_v16 = vpop.xlane.xlu0 %422  ;;  %v1598_v30 = vpop.xlane.xlu1 %408  ;;  %1105 = vmatprep.subr.bf16.mxu1 %v1187_v13 }
 0x233   :  { %vm424_vm9 = vcmp.eq.f32.partialorder %v1497_v19, %v1596_v16  ;;  %vm410_vm10 = vcmp.eq.f32.partialorder %v1499_v22, %v1598_v30 }
 0x234   :  { %v425_v9 = vsel %vm424_vm9, %v420_v17, inf  ;;  %v411_v10 = vsel %vm410_vm10, %v406_v52, inf  ;;  %v346_v52 = vshll.u32 %v345_v63, 16 }
 0x235   :  { %426 = vmin.xlane.f32.xlu0 %v425_v9  ;;  %412 = vmin.xlane.f32.xlu1 %v411_v10  ;;  %v373_v9 = vcvt.f32.s32 %v1576_v21  ;;  %v401_v21 = vcvt.f32.s32 %v1586_v15 }
 0x236   :  { %v1606_v32 = vpop.xlane.xlu0 %450  ;;  %v1608_v31 = vpop.xlane.xlu1 %436 }
 0x237   :  { %vm452_vm11 = vcmp.eq.f32.partialorder %v1513_v33, %v1606_v32  ;;  %vm438_vm12 = vcmp.eq.f32.partialorder %v1515_v34, %v1608_v31  ;;  %v443_v11 = vcvt.f32.s32 %v1608_v31 }
 0x238   :  { %v453_v19 = vsel %vm452_vm11, %v448_v51, inf  ;;  %v439_v22 = vsel %vm438_vm12, %v434_v40, inf }
 0x239   :  { %454 = vmin.xlane.f32.xlu0 %v453_v19  ;;  %440 = vmin.xlane.f32.xlu1 %v439_v22  ;;  %v374_v19 = vshll.u32 %v373_v9, 16 }
 0x23a   :  { %v1616_v46 = vpop.xlane.xlu0 %478  ;;  %v1618_v59 = vpop.xlane.xlu1 %464 }
 0x23b   :  { %vm480_vm13 = vcmp.eq.f32.partialorder %v1529_v58, %v1616_v46  ;;  %vm466_vm14 = vcmp.eq.f32.partialorder %v1531_v60, %v1618_v59 }
 0x23c   :  { %v481_v33 = vsel %vm480_vm13, %v476_v24, inf  ;;  %v467_v34 = vsel %vm466_vm14, %v462_v4, inf }
 0x23d   :  { %482 = vmin.xlane.f32.xlu0 %v481_v33  ;;  %468 = vmin.xlane.f32.xlu1 %v467_v34 }
 0x23e   :  { %v1625_v56 = vpop.xlane.xlu0 %506  ;;  %v1627_v62 = vpop.xlane.xlu1 %492 }
 0x23f   :  { %vm508_vm15 = vcmp.eq.f32.partialorder %v1544_v25, %v1625_v56  ;;  %vm494_vm1 = vcmp.eq.f32.partialorder %v1546_v5, %v1627_v62  ;;  %v317_v25 = vcvt.f32.s32 %v1560_v29  ;;  %v1188_v29 = vmov 1.0  }
 0x240   :  { %v509_v58 = vsel %vm508_vm15, %v504_v57, inf  ;;  %v495_v60 = vsel %vm494_vm1, %v490_v1, inf  ;;  %v429_v57 = vcvt.f32.s32 %v1596_v16  ;;  %v415_v1 = vcvt.f32.s32 %v1598_v30 }
 0x241   :  { %510 = vmin.xlane.f32.xlu0 %v509_v58  ;;  %496 = vmin.xlane.f32.xlu1 %v495_v60  ;;  %v318_v0 = vshll.u32 %v317_v25, 16 }
 0x242   :  { %v1633_v2 = vpop.xlane.xlu1 %520  ;;  %v430_v30 = vshll.u32 %v429_v57, 16 }
 0x243   :  { %vm522_vm2 = vcmp.eq.f32.partialorder %v1554_v12, %v1633_v2  ;;  %v359_v12 = vcvt.f32.s32 %v1578_v3  ;;  %v387_v3 = vcvt.f32.s32 %v1588_v18  ;;  %v402_v18 = vshll.u32 %v401_v21, 16 }
 0x244   :  { %v523_v6 = vsel %vm522_vm2, %v518_v26, inf }
 0x245   :  { %524 = vmin.xlane.f32.xlu1 %v523_v6  ;;  %v360_v22 = vshll.u32 %v359_v12, 16  ;;  %v388_v61 = vshll.u32 %v387_v3, 16 }
 0x2ae   :  { %v315_v5 = vpop.xlane.xlu0 %314 }
 0x2af   :  { %v316_v14 = vcvt.f32.s32 %v315_v5  ;;  %v416_v5 = vshll.u32 %v415_v1, 16  ;;  %v527_v1 = vcvt.f32.s32 %v1633_v2 }
 0x2b1   :  { %v319_v17 = vadd.s32 %v318_v0, %v316_v14  ;;  %v457_v0 = vcvt.f32.s32 %v1606_v32 }
 0x2b2   :  { %v343_v10 = vpop.xlane.xlu0 %342  ;;  %v329_v23 = vpop.xlane.xlu1 %328 }
 0x2b3   :  { %v344_v51 = vcvt.f32.s32 %v343_v10  ;;  %v330_v40 = vcvt.f32.s32 %v329_v23  ;;  %vm530_vm3 = vcmp.eq.s32.totalorder %v1432_v28, %v319_v17  ;;  %v458_v31 = vshll.u32 %v457_v0, 16 }
 0x2b4   :  { %1081 = vmatprep.mubr.msk.f32.mxu1 %vm530_vm3, %v1188_v29  ;;  %v444_v23 = vshll.u32 %v443_v11, 16 }
 0x2b5   :  { %v347_v20 = vadd.s32 %v346_v52, %v344_v51  ;;  %v333_v55 = vadd.s32 %v332_v27, %v330_v40  ;;  %v485_v27 = vcvt.f32.s32 %v1616_v46  ;;  %v471_v51 = vcvt.f32.s32 %v1618_v59 }
 0x2b6   :  { %v371_v39 = vpop.xlane.xlu0 %370  ;;  %v357_v45 = vpop.xlane.xlu1 %356 }
 0x2b7   :  { %vm531_vm4 = vcmp.eq.s32.totalorder %v1432_v28, %v333_v55  ;;  %v372_v24 = vcvt.f32.s32 %v371_v39  ;;  %v358_v4 = vcvt.f32.s32 %v357_v45  ;;  %vm532_vm5 = vcmp.eq.s32.totalorder %v1432_v28, %v347_v20 }
 0x2b8   :  { %vm1653_vm6 = vmpackc.low %vm531_vm4, %vm530_vm3  ;;  %1082 = vmatmul.mubr.msk.f32.vlgmr.msra.gmra.mxu1 %vm531_vm4, %v1188_v29  ;;  %v486_v59 = vshll.u32 %v485_v27, 16  ;;  %v472_v3 = vshll.u32 %v471_v51, 16  ;;  %v513_v39 = vcvt.f32.s32 %v1625_v56  ;;  %v499_v45 = vcvt.f32.s32 %v1627_v62 }
 0x2b9   :  { %v375_v34 = vadd.s32 %v374_v19, %v372_v24  ;;  %v361_v15 = vadd.s32 %v360_v22, %v358_v4  ;;  %1084 = vmatprep.mubr.msk.f32.mxu1 %vm532_vm5, %v1188_v29 }
 0x2ba   :  { %v399_v58 = vpop.xlane.xlu0 %398  ;;  %v385_v60 = vpop.xlane.xlu1 %384  ;;  %v514_v62 = vshll.u32 %v513_v39, 16  ;;  %v500_v57 = vshll.u32 %v499_v45, 16 }
 0x2bb   :  { %v400_v26 = vcvt.f32.s32 %v399_v58  ;;  %v386_v6 = vcvt.f32.s32 %v385_v60  ;;  %vm533_vm7 = vcmp.eq.s32.totalorder %v1432_v28, %v361_v15  ;;  %vm534_vm8 = vcmp.eq.s32.totalorder %v1432_v28, %v375_v34 }
 0x2bc   :  { %1085 = vmatmul.mubr.msk.f32.gmra.mxu1 %vm533_vm7, %v1188_v29  ;;  %vm1668_vm9 = vmpackc.low %vm533_vm7, %vm532_vm5 }
 0x2bd   :  { %v403_v63 = vadd.s32 %v402_v18, %v400_v26  ;;  %v389_v16 = vadd.s32 %v388_v61, %v386_v6  ;;  %1087 = vmatprep.mubr.msk.f32.mxu1 %vm534_vm8, %v1188_v29 }
 0x2be   :  { %v427_v14 = vpop.xlane.xlu0 %426  ;;  %v413_v17 = vpop.xlane.xlu1 %412 }
 0x2bf   :  { %v428_v52 = vcvt.f32.s32 %v427_v14  ;;  %v414_v9 = vcvt.f32.s32 %v413_v17  ;;  %vm535_vm10 = vcmp.eq.s32.totalorder %v1432_v28, %v389_v16  ;;  %vm536_vm11 = vcmp.eq.s32.totalorder %v1432_v28, %v403_v63 }
 0x2c0   :  { %1088 = vmatmul.mubr.msk.f32.gmra.mxu1 %vm535_vm10, %v1188_v29  ;;  %vm1682_vm12 = vmpackc.low %vm535_vm10, %vm534_vm8  ;;  %v1189_v14 = vmov 1.0|1.0  }
 0x2c1   :  { %v431_v10 = vadd.s32 %v430_v30, %v428_v52  ;;  %v417_v32 = vadd.s32 %v416_v5, %v414_v9  ;;  %1090 = vmatprep.mubr.msk.f32.mxu1 %vm536_vm11, %v1188_v29  ;;  %v528_v5 = vshll.u32 %v527_v1, 16 }
 0x2c2   :  { %v455_v40 = vpop.xlane.xlu0 %454  ;;  %v441_v20 = vpop.xlane.xlu1 %440 }
 0x2c3   :  { %v456_v55 = vcvt.f32.s32 %v455_v40  ;;  %v442_v19 = vcvt.f32.s32 %v441_v20  ;;  %vm537_vm13 = vcmp.eq.s32.totalorder %v1432_v28, %v417_v32  ;;  %vm538_vm14 = vcmp.eq.s32.totalorder %v1432_v28, %v431_v10 }
 0x2c4   :  { %1091 = vmatmul.mubr.msk.f32.gmra.mxu1 %vm537_vm13, %v1188_v29  ;;  %vm1696_vm15 = vmpackc.low %vm537_vm13, %vm536_vm11 }
 0x2c5   :  { %v459_v21 = vadd.s32 %v458_v31, %v456_v55  ;;  %v445_v46 = vadd.s32 %v444_v23, %v442_v19  ;;  %1093 = vmatprep.mubr.msk.f32.mxu1 %vm538_vm14, %v1188_v29 }
 0x2c6   :  { %v483_v24 = vpop.xlane.xlu0 %482  ;;  %v469_v4 = vpop.xlane.xlu1 %468 }
 0x2c7   :  { %v484_v34 = vcvt.f32.s32 %v483_v24  ;;  %v470_v15 = vcvt.f32.s32 %v469_v4  ;;  %vm539_vm1 = vcmp.eq.s32.totalorder %v1432_v28, %v445_v46  ;;  %vm540_vm2 = vcmp.eq.s32.totalorder %v1432_v28, %v459_v21 }
 0x2c8   :  { %1094 = vmatmul.mubr.msk.f32.gmra.mxu1 %vm539_vm1, %v1188_v29  ;;  %vm1710_vm3 = vmpackc.low %vm539_vm1, %vm538_vm14 }
 0x2c9   :  { %v487_v61 = vadd.s32 %v486_v59, %v484_v34  ;;  %v473_v56 = vadd.s32 %v472_v3, %v470_v15  ;;  %1096 = vmatprep.mubr.msk.f32.mxu1 %vm540_vm2, %v1188_v29 }
 0x2ca   :  { %v511_v58 = vpop.xlane.xlu0 %510  ;;  %v497_v60 = vpop.xlane.xlu1 %496 }
 0x2cb   :  { %v512_v26 = vcvt.f32.s32 %v511_v58  ;;  %v498_v6 = vcvt.f32.s32 %v497_v60  ;;  %vm541_vm4 = vcmp.eq.s32.totalorder %v1432_v28, %v473_v56  ;;  %vm542_vm5 = vcmp.eq.s32.totalorder %v1432_v28, %v487_v61 }
 0x2cc   :  { %1097 = vmatmul.mubr.msk.f32.gmra.mxu1 %vm541_vm4, %v1188_v29  ;;  %vm1723_vm7 = vmpackc.low %vm541_vm4, %vm540_vm2 }
 0x2cd   :  { %v515_v16 = vadd.s32 %v514_v62, %v512_v26  ;;  %v501_v30 = vadd.s32 %v500_v57, %v498_v6  ;;  %1099 = vmatprep.mubr.msk.f32.mxu1 %vm542_vm5, %v1188_v29 }
 0x2ce   :  { %v525_v2 = vpop.xlane.xlu1 %524 }
 0x2cf   :  { %v526_v0 = vcvt.f32.s32 %v525_v2  ;;  %vm543_vm8 = vcmp.eq.s32.totalorder %v1432_v28, %v501_v30  ;;  %vm544_vm10 = vcmp.eq.s32.totalorder %v1432_v28, %v515_v16 }
 0x2d0   :  { %1100 = vmatmul.mubr.msk.f32.gmra.mxu1 %vm543_vm8, %v1188_v29  ;;  %vm946_vm11 = vmpackc.low %vm543_vm8, %vm542_vm5 }
 0x2d1   :  { %v529_v11 = vadd.s32 %v528_v5, %v526_v0  ;;  %1102 = vmatprep.mubr.msk.f32.mxu1 %vm544_vm10, %v1188_v29 }
 0x2d3   :  { %vm545_vm13 = vcmp.eq.s32.totalorder %v1432_v28, %v529_v11  ;;  %v739_v28 = vld [vmem:[%s1862_s3] sm:$0x3] }
 0x2d4   :  { %1103 = vmatmul.mubr.msk.f32.gmra.mxu1 %vm545_vm13, %v1188_v29  ;;  %vm944_vm14 = vmpackc.low %vm545_vm13, %vm544_vm10  ;;  %v740_v29 = vpack.c.bf16 %v739_v28, %v739_v28 }
 0x2d5   :  { %1106 = vmatpush3.bf16.xpose.msk.msra.mxu1 %vm944_vm14, %v1189_v14 }
 0x2d6   :  { %1107 = vmatprep.subr.bf16.mxu1 %v1187_v13 }
 0x2dd   :  { %1108 = vmatpush3.bf16.xpose.msk.msra.mxu1 %vm946_vm11, %v1189_v14 }
 0x2de   :  { %1109 = vmatprep.subr.bf16.mxu1 %v1187_v13 }
 0x2e5   :  { %1110 = vmatpush3.bf16.xpose.msk.msra.mxu1 %vm1723_vm7, %v1189_v14 }
 0x2e6   :  { %1111 = vmatprep.subr.bf16.mxu1 %v1187_v13 }
 0x2ed   :  { %1112 = vmatpush3.bf16.xpose.msk.msra.mxu1 %vm1710_vm3, %v1189_v14 }
 0x2ee   :  { %1113 = vmatprep.subr.bf16.mxu1 %v1187_v13 }
 0x2f5   :  { %1114 = vmatpush3.bf16.xpose.msk.msra.mxu1 %vm1696_vm15, %v1189_v14  ;;  %vm1190_vm15 = vmmov 0  }
 0x2f6   :  { %1115 = vmatprep.subr.bf16.mxu1 %v1187_v13  ;;  %1121 = vmatprep.mubr.msk.bf16.mxu1 %vm1190_vm15, %v1187_v13 }
 0x2fd   :  { %1116 = vmatpush3.bf16.xpose.msk.msra.mxu1 %vm1682_vm12, %v1189_v14 }
 0x2fe   :  { %1117 = vmatprep.subr.bf16.mxu1 %v1187_v13 }
 0x305   :  { %1118 = vmatpush3.bf16.xpose.msk.msra.mxu1 %vm1668_vm9, %v1189_v14 }
 0x306   :  { %1119 = vmatprep.subr.bf16.mxu1 %v1187_v13 }
 0x30d   :  { %1120 = vmatpush3.bf16.xpose.msk.msra.mxu1 %vm1653_vm6, %v1189_v14 }
 0x314   :  { %1122 = vmatmul.mubr.bf16.vlgmr.msra.gmra.mxu1 %v740_v29 }
 0x378   :  { %v1083_v17 = vpop.f32.mrf.mxu1 }
 0x379   :  { %724 = vst.msk [vmem:[%s1863_s4 + $0x8] sm:$0xff] %vm71_vm0, %v1083_v17  ;;  %v797_v25 = vsub.f32 %v1083_v17, %v1251_v8 }
 0x37a   :  { %v644_v52 = vpop.f32.mrf.mxu1 }
 0x37b   :  { %723 = vst.msk [vmem:[%s1863_s4] sm:$0xff] %vm71_vm0, %v644_v52  ;;  %v796_v33 = vsub.f32 %v644_v52, %v1246_v7  ;;  %v813_v12 = vmul.f32 %v797_v25, %v797_v25 }
 0x37c   :  { %v1086_v9 = vpop.f32.mrf.mxu1 }
 0x37d   :  { %v812_v13 = vmul.f32 %v796_v33, %v796_v33  ;;  %726 = vst.msk [vmem:[%s1863_s4 + $0x18] sm:$0xff] %vm71_vm0, %v1086_v9  ;;  %v799_v10 = vsub.f32 %v1086_v9, %v1313_v36  ;;  %v829_v23 = vsel %vm71_vm0, %v813_v12, 0.0 }
 0x37e   :  { %v654_v32 = vpop.f32.mrf.mxu1 }
 0x37f   :  { %v828_v8 = vsel %vm71_vm0, %v812_v13, 0.0  ;;  %725 = vst.msk [vmem:[%s1863_s4 + $0x10] sm:$0xff] %vm71_vm0, %v654_v32  ;;  %v798_v7 = vsub.f32 %v654_v32, %v1308_v35  ;;  %v815_v27 = vmul.f32 %v799_v10, %v799_v10 }
 0x380   :  { %v1089_v31 = vpop.f32.mrf.mxu1  ;;  %v830_v40 = vadd.f32 %v829_v23, %v828_v8 }
 0x381   :  { %v814_v51 = vmul.f32 %v798_v7, %v798_v7  ;;  %728 = vst.msk [vmem:[%s1863_s4 + $0x28] sm:$0xff] %vm71_vm0, %v1089_v31  ;;  %v801_v36 = vsub.f32 %v1089_v31, %v1323_v38  ;;  %v833_v21 = vsel %vm71_vm0, %v815_v27, 0.0 }
 0x382   :  { %v664_v20 = vpop.f32.mrf.mxu1 }
 0x383   :  { %v831_v55 = vsel %vm71_vm0, %v814_v51, 0.0  ;;  %727 = vst.msk [vmem:[%s1863_s4 + $0x20] sm:$0xff] %vm71_vm0, %v664_v20  ;;  %v800_v35 = vsub.f32 %v664_v20, %v1318_v37  ;;  %v817_v46 = vmul.f32 %v801_v36, %v801_v36 }
 0x384   :  { %v832_v19 = vadd.f32 %v831_v55, %v830_v40  ;;  %v1092_v22 = vpop.f32.mrf.mxu1 }
 0x385   :  { %v816_v59 = vmul.f32 %v800_v35, %v800_v35  ;;  %730 = vst.msk [vmem:[%s1863_s4 + $0x38] sm:$0xff] %vm71_vm0, %v1092_v22  ;;  %v803_v38 = vsub.f32 %v1092_v22, %v1339_v42  ;;  %v837_v34 = vsel %vm71_vm0, %v817_v46, 0.0 }
 0x386   :  { %v834_v3 = vadd.f32 %v833_v21, %v832_v19  ;;  %v674_v39 = vpop.f32.mrf.mxu1 }
 0x387   :  { %v835_v45 = vsel %vm71_vm0, %v816_v59, 0.0  ;;  %729 = vst.msk [vmem:[%s1863_s4 + $0x30] sm:$0xff] %vm71_vm0, %v674_v39  ;;  %v802_v37 = vsub.f32 %v674_v39, %v1334_v41  ;;  %v819_v15 = vmul.f32 %v803_v38, %v803_v38 }
 0x388   :  { %v836_v24 = vadd.f32 %v835_v45, %v834_v3  ;;  %v1095_v4 = vpop.f32.mrf.mxu1 }
 0x389   :  { %v818_v18 = vmul.f32 %v802_v37, %v802_v37  ;;  %732 = vst.msk [vmem:[%s1863_s4 + $0x48] sm:$0xff] %vm71_vm0, %v1095_v4  ;;  %v805_v42 = vsub.f32 %v1095_v4, %v1349_v44  ;;  %v841_v58 = vsel %vm71_vm0, %v819_v15, 0.0 }
 0x38a   :  { %v838_v61 = vadd.f32 %v837_v34, %v836_v24  ;;  %v684_v56 = vpop.f32.mrf.mxu1 }
 0x38b   :  { %v839_v62 = vsel %vm71_vm0, %v818_v18, 0.0  ;;  %731 = vst.msk [vmem:[%s1863_s4 + $0x40] sm:$0xff] %vm71_vm0, %v684_v56  ;;  %v804_v41 = vsub.f32 %v684_v56, %v1344_v43  ;;  %v821_v60 = vmul.f32 %v805_v42, %v805_v42 }
 0x38c   :  { %v840_v57 = vadd.f32 %v839_v62, %v838_v61  ;;  %v1098_v1 = vpop.f32.mrf.mxu1 }
 0x38d   :  { %v820_v26 = vmul.f32 %v804_v41, %v804_v41  ;;  %734 = vst.msk [vmem:[%s1863_s4 + $0x58] sm:$0xff] %vm71_vm0, %v1098_v1  ;;  %v807_v44 = vsub.f32 %v1098_v1, %v1365_v48  ;;  %v845_v5 = vsel %vm71_vm0, %v821_v60, 0.0 }
 0x38e   :  { %v842_v6 = vadd.f32 %v841_v58, %v840_v57  ;;  %v694_v63 = vpop.f32.mrf.mxu1 }
 0x38f   :  { %v843_v16 = vsel %vm71_vm0, %v820_v26, 0.0  ;;  %733 = vst.msk [vmem:[%s1863_s4 + $0x50] sm:$0xff] %vm71_vm0, %v694_v63  ;;  %v806_v43 = vsub.f32 %v694_v63, %v1360_v47  ;;  %v823_v0 = vmul.f32 %v807_v44, %v807_v44 }
 0x390   :  { %v844_v30 = vadd.f32 %v843_v16, %v842_v6  ;;  %v1101_v2 = vpop.f32.mrf.mxu1 }
 0x391   :  { %v822_v11 = vmul.f32 %v806_v43, %v806_v43  ;;  %736 = vst.msk [vmem:[%s1863_s4 + $0x68] sm:$0xff] %vm71_vm0, %v1101_v2  ;;  %v809_v48 = vsub.f32 %v1101_v2, %v1375_v50  ;;  %v849_v52 = vsel %vm71_vm0, %v823_v0, 0.0 }
 0x392   :  { %v846_v14 = vadd.f32 %v845_v5, %v844_v30  ;;  %v704_v28 = vpop.f32.mrf.mxu1 }
 0x393   :  { %v847_v29 = vsel %vm71_vm0, %v822_v11, 0.0  ;;  %735 = vst.msk [vmem:[%s1863_s4 + $0x60] sm:$0xff] %vm71_vm0, %v704_v28  ;;  %v808_v47 = vsub.f32 %v704_v28, %v1370_v49  ;;  %v825_v33 = vmul.f32 %v809_v48, %v809_v48 }
 0x394   :  { %v848_v17 = vadd.f32 %v847_v29, %v846_v14  ;;  %v1104_v25 = vpop.f32.mrf.mxu1 }
 0x395   :  { %v824_v9 = vmul.f32 %v808_v47, %v808_v47  ;;  %738 = vst.msk [vmem:[%s1863_s4 + $0x78] sm:$0xff] %vm71_vm0, %v1104_v25  ;;  %v811_v50 = vsub.f32 %v1104_v25, %v1391_v54  ;;  %v853_v8 = vsel %vm71_vm0, %v825_v33, 0.0 }
 0x396   :  { %v850_v12 = vadd.f32 %v849_v52, %v848_v17  ;;  %v714_v13 = vpop.f32.mrf.mxu1 }
 0x397   :  { %v851_v10 = vsel %vm71_vm0, %v824_v9, 0.0  ;;  %737 = vst.msk [vmem:[%s1863_s4 + $0x70] sm:$0xff] %vm71_vm0, %v714_v13  ;;  %v810_v49 = vsub.f32 %v714_v13, %v1386_v53  ;;  %v827_v7 = vmul.f32 %v811_v50, %v811_v50  ;;  %s1191_s4 = smov [#allocation2]  }
 0x398   :  { %v852_v32 = vadd.f32 %v851_v10, %v850_v12  ;;  %s879_s3 = sshll.u32 %s1191_s4, 4  ;;  %s880_s3 = int_to_ptr.vmem [resolvable:$true] %s879_s3 }
 0x399   :  { %v826_v31 = vmul.f32 %v810_v49, %v810_v49  ;;  %v857_v51 = vsel %vm71_vm0, %v827_v7, 0.0  ;;  %s1143_s17 = scalar_lea.vmem %s880_s3, 16  ;;  %s1147_s18 = scalar_lea.vmem %s880_s3, 32 }
 0x39a   :  { %v854_v23 = vadd.f32 %v853_v8, %v852_v32  ;;  %p1144_p0 = scmp.ne.s32.totalorder %s880_s3, %s1143_s17  ;;  %p1148_p1 = scmp.lt.s32.totalorder %s880_s3, %s880_s3 }
 0x39b   :  { %v855_v27 = vsel %vm71_vm0, %v826_v31, 0.0  ;;  %p1149_p2 = scmp.lt.s32.totalorder %s1147_s18, %s1143_s17 }
 0x39c   :  { %v856_v54 = vadd.f32 %v855_v27, %v854_v23 }
 0x39d   :  { %p1150_p3 = por %p1149_p2, %p1148_p1 }
 0x39e   :  { %v858_v36 = vadd.f32 %v857_v51, %v856_v54 }
 0x39f   :  { %p1151_p4 = pnand %p1150_p3, %p1144_p0 }
 0x3a0   :  { %859 = vadd.xlane.f32.xlu0 %v858_v36 }
 0x3d4   :  { %v783_v40 = vpop.f32.mrf.mxu1 }
 0x3d5   :  { %v789_v35 = vmul.f32 256.0, %v783_v40  ;;  %v791_v19 = vrot.slane %v783_v40, 1 }
 0x3d6   :  { %v1123_v20 = vpop.f32.mrf.mxu1 }
 0x3d7   :  { %v793_v53 = vadd.f32 %v791_v19, %v789_v35 }
 0x3d8   :  { %v786_v55 = vpop.f32.mrf.mxu1 }
 0x3d9   :  { %v1133_v21 = vtrunc.f32 %v793_v53 }
 0x3da   :  { %v1124_v22 = vpop.f32.mrf.mxu1 }
 0x3db   :  { %v1134_v46 = vcvt.f32.s32 %v1133_v21 }
 0x3dd   :  { %795 = vst [vmem:[#allocation2] sm:$0x1] %v1134_v46 }
 0x3de   :  { %1154 = shalt.err (!%p1151_p4)
}
 0x3df   :  { %882 = dma.vmem_to_hbm [thread:$0]  %s880_s3, 16, %s1864_s5, [#allocation3]   ;;  %vm869_vm0 = vcmask 0  }
 0x3e0   :  { %s1192_s21 = smov [#allocation4]  }
 0x3e1   :  { %s889_s22 = sshll.u32 %s1192_s21, 4  ;;  %s890_s22 = int_to_ptr.vmem [resolvable:$true] %s889_s22 }
 0x3e2   :  { %s1163_s24 = scalar_lea.vmem %s890_s22, 16  ;;  %s1167_s25 = scalar_lea.vmem %s890_s22, 32 }
 0x3e3   :  { %p1164_p5 = scmp.ne.s32.totalorder %s890_s22, %s1163_s24  ;;  %p1168_p6 = scmp.lt.s32.totalorder %s890_s22, %s890_s22 }
 0x3e4   :  { %p1169_p7 = scmp.lt.s32.totalorder %s1167_s25, %s1163_s24 }
 0x3e6   :  { %p1170_p8 = por %p1169_p7, %p1168_p6 }
 0x3e8   :  { %p1171_p9 = pnand %p1170_p8, %p1164_p5 }
 0x429   :  { %v860_v59 = vpop.xlane.xlu0 %859 }
 0x42a   :  { %v861_v38 = vrot.slane %v860_v59, 4 }
 0x42c   :  { %v862_v3 = vadd.f32 %v861_v38, %v860_v59 }
 0x42e   :  { %v863_v39 = vrot.slane %v862_v3, 2 }
 0x430   :  { %v864_v45 = vadd.f32 %v863_v39, %v862_v3 }
 0x432   :  { %v865_v37 = vrot.slane %v864_v45, 1 }
 0x434   :  { %v866_v24 = vadd.f32 %v865_v37, %v864_v45 }
 0x436   :  { %1135 = vpush %v866_v24 }
 0x467   :  { %s1136_s23 = spop %1135 }
 0x468   :  { %v868_v4 = vstv %s1136_s23 }
 0x469   :  { %870 = vst.msk [vmem:[#allocation4] sm:$0x1] %vm869_vm0, %v868_v4 }
 0x46a   :  { %1174 = shalt.err (!%p1171_p9)
}
 0x46b   :  { %892 = dma.vmem_to_hbm [thread:$0]  %s890_s22, 16, %s1865_s6, [#allocation5]  }
 0x46c   :  { %1183 = dma.done.wait [#allocation3], 16  }
 0x46d   :  { %1184 = vsyncadd [#allocation3], 4294967280 }
 0x46e   :  { %1185 = dma.done.wait [#allocation5], 16  }
 0x46f   :  { %1186 = vsyncadd [#allocation5], 4294967280 }
 0x470   :  { %901 = vsyncpa [#allocation3], 1 }
 0x471   :  { %902 = vsyncpa [#allocation5], 1 }

</bundles_post_ra>
